<compile_context>
chip_gen: v5e
topology: v5e:2x2
jax: 0.10.0
libtpu: 0.0.40
codegen_flags: <defaults>
</compile_context>

<pallas_src>
import functools

import jax
import jax.numpy as jnp
from jax import lax
from jax.experimental import pallas as pl
from jax.experimental.pallas import tpu as pltpu

# kompil's pixelnorm() default epsilon; ObservedPixelNorm.forward calls
# pixelnorm(x) with the default, its stored self.eps is only quantization
# bookkeeping.
# TODO(synk): thread the module's self.eps through if a variant ever passes it.
EPS = 1e-8

_TARGET_BLOCK_BYTES = 4 * 1024 * 1024   # ~4 MiB of input data per grid step
_WORKING_SET_FACTOR = 8                 # 2x-buffered in+out (4x) + f32 temporaries headroom


def _vmem_budget_bytes():
    """Generation-aware scoped-VMEM budget (fraction of physical, capped)."""
    phys = 64 * 1024 * 1024  # conservative fallback: v7x per-TC physical VMEM
    try:
        info = pltpu.get_tpu_info()
        phys = int(getattr(info, "vmem_capacity_bytes", phys))
    except Exception:
        pass
    # Use at most ~60% of physical, never more than 48 MiB, never below 16 MiB.
    return max(16 * 1024 * 1024, min(int(phys * 0.6), 48 * 1024 * 1024))


def _pixelnorm_kernel(x_ref, o_ref, *, inv_c):
    # Block view is either (C, TILE) (spatial-tiled path, batch squeezed) or
    # (Bt, C, HW) (batch-blocked path).  In both, the channel axis is axis -2.
    x = x_ref[...]
    xf = x.astype(jnp.float32)
    # sum(x^2) over channels; fold 1/C into the rsqrt argument (one constant
    # multiply on a lane-row temporary instead of a full-tile divide).
    ssq = jnp.sum(xf * xf, axis=-2, keepdims=True)
    inv = lax.rsqrt(ssq * inv_c + EPS)               # EUP rsqrt
    o_ref[...] = (xf * inv).astype(o_ref.dtype)


def pixelnorm(x):
    """PixelNorm over the channel dim of an NCHW tensor, via a Pallas TPU kernel."""
    B, C, H, W = x.shape
    HW = H * W
    itemsize = jnp.dtype(x.dtype).itemsize

    # Pure layout plumbing: lane-dense flattened spatial axis.
    x_flat = x.reshape(B, C, HW)

    budget = _vmem_budget_bytes()
    max_block_bytes = min(_TARGET_BLOCK_BYTES, budget // _WORKING_SET_FACTOR)
    max_block_bytes = max(max_block_bytes, 128 * 1024)

    per_batch_bytes = C * HW * itemsize
    kernel = functools.partial(_pixelnorm_kernel, inv_c=1.0 / C)
    out_shape = jax.ShapeDtypeStruct((B, C, HW), x.dtype)

    if per_batch_bytes <= max_block_bytes:
        # Small feature maps: block several batch elements per grid step so
        # each step moves one contiguous Bt*C*HW slab instead of many tiny
        # strided chunks.
        bt = max(1, max_block_bytes // per_batch_bytes)
        if B >= 2:
            bt = min(bt, pl.cdiv(B, 2))   # keep >= 2 grid steps (v7x: 2 TCs)
        bt = min(bt, B)
        grid = (pl.cdiv(B, bt),)
        out_flat = pl.pallas_call(
            kernel,
            out_shape=out_shape,
            grid_spec=pltpu.PrefetchScalarGridSpec(
                num_scalar_prefetch=0,
                grid=grid,
                in_specs=[pl.BlockSpec((bt, C, HW), lambda b: (b, 0, 0))],
                out_specs=pl.BlockSpec((bt, C, HW), lambda b: (b, 0, 0)),
            ),
            compiler_params=pltpu.CompilerParams(
                dimension_semantics=("parallel",),
                vmem_limit_bytes=budget,
            ),
        )(x_flat)
    else:
        # Large feature maps: fixed 128-multiple spatial tile sized by bytes;
        # pl.cdiv grid masks the ragged edge block (channel reduction is
        # intra-block, so padded lanes never reach valid output).
        tile = (max_block_bytes // (C * itemsize)) // 128 * 128
        tile = max(128, tile)
        if B == 1 and HW > 256:
            # With a single batch, keep >= 2 spatial tiles for v7x's two TCs.
            half = pl.cdiv(pl.cdiv(HW, 2), 128) * 128
            tile = min(tile, max(128, half))
        if tile >= HW:
            tile = HW                      # full-extent last dim: always legal
        grid = (B, pl.cdiv(HW, tile))
        out_flat = pl.pallas_call(
            kernel,
            out_shape=out_shape,
            grid_spec=pltpu.PrefetchScalarGridSpec(
                num_scalar_prefetch=0,
                grid=grid,
                in_specs=[pl.BlockSpec((pl.Squeezed(), C, tile),
                                       lambda b, s: (b, 0, s))],
                out_specs=pl.BlockSpec((pl.Squeezed(), C, tile),
                                       lambda b, s: (b, 0, s)),
            ),
            compiler_params=pltpu.CompilerParams(
                dimension_semantics=("parallel", "parallel"),
                vmem_limit_bytes=budget,
            ),
        )(x_flat)

    return out_flat.reshape(B, C, H, W)


def pixelnorm_ref(x):
    ms = jnp.mean(x.astype(jnp.float32) ** 2, axis=1, keepdims=True)
    return (x.astype(jnp.float32) * lax.rsqrt(ms + EPS)).astype(x.dtype)


if __name__ == "__main__":
    key = jax.random.PRNGKey(0)
    # Small NCHW input consistent with the conv-style module.
    x = jax.random.normal(key, (2, 4, 16, 16), dtype=jnp.float32)

    out = pixelnorm(x)
    out = jax.block_until_ready(out)

    ref = pixelnorm_ref(x)
    assert out.shape == x.shape and out.dtype == x.dtype
    assert jnp.allclose(out, ref, atol=1e-5, rtol=1e-5), "mismatch vs reference"

    # Also exercise the spatial-tiled (large H*W, ragged edge) path.
    x2 = jax.random.normal(jax.random.PRNGKey(1), (1, 4, 720, 1280), dtype=jnp.float32)
    out2 = jax.block_until_ready(pixelnorm(x2))
    ref2 = pixelnorm_ref(x2)
    assert jnp.allclose(out2, ref2, atol=1e-5, rtol=1e-5), "mismatch vs reference (tiled path)"

    print("KERNEL_OK")
</pallas_src>

<mosaic_0001>
module attributes {stable_mosaic.version = 11 : i64} {
  func.func @_pixelnorm_kernel(%arg0: i32, %arg1: memref<1x4x256xf32, #tpu.memory_space<vmem>>, %arg2: memref<1x4x256xf32, #tpu.memory_space<vmem>>) attributes {dimension_semantics = [#tpu.dimension_semantics<parallel>], iteration_bounds = array<i64: 2>, scalar_prefetch = 0 : i64, scratch_operands = 0 : i64, tpu.core_type = #tpu.core_type<tc>, window_params = [{transform_indices = @transform_0, window_bounds = array<i64: 1, 4, 256>}, {transform_indices = @transform_1, window_bounds = array<i64: 1, 4, 256>}]} {
    %c0 = arith.constant 0 : index
    %c0_0 = arith.constant 0 : index
    %c0_1 = arith.constant 0 : index
    %0 = vector.load %arg1[%c0, %c0_0, %c0_1] : memref<1x4x256xf32, #tpu.memory_space<vmem>>, vector<1x4x256xf32>
    %1 = arith.mulf %0, %0 : vector<1x4x256xf32>
    %cst = arith.constant dense<0.000000e+00> : vector<1x256xf32>
    %2 = vector.multi_reduction <add>, %1, %cst [1] : vector<1x4x256xf32> to vector<1x256xf32>
    %3 = vector.shape_cast %2 : vector<1x256xf32> to vector<1x1x256xf32>
    %cst_2 = arith.constant 2.500000e-01 : f32
    %4 = vector.broadcast %cst_2 : f32 to vector<1x1x256xf32>
    %5 = arith.mulf %3, %4 : vector<1x1x256xf32>
    %cst_3 = arith.constant 9.99999993E-9 : f32
    %6 = vector.broadcast %cst_3 : f32 to vector<1x1x256xf32>
    %7 = arith.addf %5, %6 : vector<1x1x256xf32>
    %8 = math.rsqrt %7 : vector<1x1x256xf32>
    %9 = vector.broadcast %8 : vector<1x1x256xf32> to vector<1x4x256xf32>
    %10 = arith.mulf %0, %9 : vector<1x4x256xf32>
    %c0_4 = arith.constant 0 : index
    %c0_5 = arith.constant 0 : index
    %c0_6 = arith.constant 0 : index
    %11 = vector.load %arg2[%c0_4, %c0_5, %c0_6] : memref<1x4x256xf32, #tpu.memory_space<vmem>>, vector<1x4x256xf32>
    tpu.vector_store %arg2[%c0_4, %c0_5, %c0_6], %10 {strides = array<i32>} : memref<1x4x256xf32, #tpu.memory_space<vmem>>, vector<1x4x256xf32>,
    return
  }
  func.func @transform_0(%arg0: i32) -> (i32, i32, i32) {
    %c0_i32 = arith.constant 0 : i32
    %c0_i32_0 = arith.constant 0 : i32
    %c0_i32_1 = arith.constant 0 : i32
    return %arg0, %c0_i32, %c0_i32_0 : i32, i32, i32
  }
  func.func @transform_1(%arg0: i32) -> (i32, i32, i32) {
    %c0_i32 = arith.constant 0 : i32
    %c0_i32_0 = arith.constant 0 : i32
    %c0_i32_1 = arith.constant 0 : i32
    return %arg0, %c0_i32, %c0_i32_0 : i32, i32, i32
  }
}

</mosaic_0001>

<bundles_post_ra>
// kernel: tpu_custom_call.1
= control target key start
LH: loop header
LB: loop body
LE: loop exit
PB: predicated region body
PF: predicated region fallthrough
CT: control target
= control target key end

     0   :  { %6 = vsyncpa [#allocation3], 0  ;;  %s584_s0 = inlined_call_operand.hbm [shape: f32[2,4,256], index: 0, kind: input, shape index: {}]   ;;  %s585_s1 = inlined_call_operand.hbm [shape: f32[2,4,256], index: 1, kind: output, shape index: {}]  }
   0x1   :  { %8 = vsyncpa [#allocation3 + $0x1], 0 }
   0x2   :  { %9 = vsyncpa [#allocation4], 0 }
   0x3   :  { %11 = vsyncpa [#allocation4 + $0x1], 0  ;;  %s450_s6 = smov 0   ;;  %s452_s7 = smov 0  }
   0x4   :  { %s454_s8 = smov 0   ;;  %s456_s9 = smov 0  }
   0x5 LB: > { %s471_s10 = sadd.s32 4294967295, %s438_s9   ;;  %s276_s11 = sadd.s32 4294967294, %s438_s9   ;;  %s438_s9 = sphi %s456_s9, %s595_s9   ;;  %s434_s8 = sphi %s454_s8, %s594_s8   ;;  %s430_s7 = sphi %s452_s7, %s593_s7   ;;  %s426_s6 = sphi %s450_s6, %s592_s6  }
   0x6   : > { %s475_s12 = sadd.s32 1, %s438_s9   ;;  %s24_s13 = sadd.s32 1, %s434_s8 }
   0x7   : > { %s21_s14 = ssub.s32 %s438_s9, %s475_s12  ;;  %p31_p0 = scmp.ne.s32.totalorder %s434_s8, %s430_s7 }
   0x8   : > { %p22_p1 = scmp.eq.s32.totalorder %s21_s14, 0  ;;  %p32_p2 = scmp.eq.s32.totalorder %s438_s9, 0 }
   0x9   : > { %p37_p3 = scmp.ne.s32.totalorder %s430_s7, %s426_s6  ;;  %p38_p4 = scmp.eq.s32.totalorder %s471_s10, 0 }
   0xa   : > { %s487_s15 = scalar_select %p22_p1, %s434_s8, %s24_s13  }
   0xb   : > { %p489_p5 = por %p32_p2, %p31_p0  ;;  %p493_p6 = por %p38_p4, %p37_p3 }
   0xc   : > { %p61_p7 = scmp.eq.s32.totalorder %s471_s10, 1  ;;  %p67_p8 = scmp.eq.s32.totalorder %s276_s11, 1 }
   0xd   : > { %p304_p10 = scmp.lt.s32.totalorder %s438_s9, 2  ;;  %s87_s20 = sand.u32 1, %s434_s8  }
   0xe   : > { %p500_p11 = por %p61_p7, %p31_p0  ;;  %p504_p12 = por %p67_p8, %p37_p3 }
   0xf   : > { %s290_s21 = sshll.u32 %s438_s9, 3  ;;  %s279_s22 = sshll.u32 %s87_s20, 3 }
  0x10   : > { %s96_s25 = scalar_lea.hbm %s584_s0, %s290_s21  ;;  %s91_s27 = scalar_lea.vmem [#allocation2], %s279_s22 }
  0x11   : > { %s98_s26 = sshll.u32 %s96_s25, 4  ;;  %s100_s28 = sshll.u32 %s91_s27, 4  ;;  %s99_s26 = int_to_ptr.hbm [resolvable:$true] %s98_s26  ;;  %s101_s28 = int_to_ptr.vmem [resolvable:$true] %s100_s28 }
  0x12   : > { %p515_p13 = pnand %p304_p10, %p489_p5  ;;  %p282_p0 = scmp.ge.s32.totalorder %s438_s9, 1 }
  0x13   : > { %p105_p1 = scmp.lt.s32.totalorder %s438_s9, 3  ;;  %s88_s30 = scalar_lea.sflag [#allocation3], %s87_s20 }
  0x14   : > { %s342_s2 = sshra.s32 %s99_s26, 4  ;;  %p346_p3 = pneg %p515_p13  ;;  %s343_s2 = int_to_ptr.hbm [resolvable:$true] %s342_s2 }
  0x15   : > { %s344_s3 = scalar_lea.hbm %s343_s2, 8  ;;  %s349_s11 = scalar_lea.hbm %s584_s0, 16 }
  0x16   : > { %p345_p2 = scmp.ne.s32.totalorder %s343_s2, %s344_s3  ;;  %p350_p5 = scmp.lt.s32.totalorder %s343_s2, %s584_s0 }
  0x17   : > { %p351_p8 = scmp.lt.s32.totalorder %s349_s11, %s344_s3 }
  0x18   : > { %p347_p4 = pnand %p346_p3, %p345_p2 }
  0x19   : > { %p352_p10 = por %p351_p8, %p350_p5 }
  0x1a   : > { %p348_p7 = pneg %p347_p4 }
  0x1c   : > { %p353_p9 = pnand %p352_p10, %p348_p7 }
  0x1e   : > { %356 = shalt.err (!%p353_p9)
}
  0x1f   : > { %299 = dma.hbm_to_vmem [thread:$0]  (!%p515_p13), %s99_s26, 128, %s101_s28, %s88_s30  }
  0x20   : > { %p106_p2 = pnand %p282_p0, %p105_p1 }
  0x21   : > { %s536_s16 = sand.u32 (!%p106_p2), 1, %s430_s7  }
  0x22   : > { %109 = sbr.rel (%p106_p2) target bundleno = 95 (0x5f), region = 24  ;;  %s283_s20 = sshll.u32 (!%p106_p2), %s536_s16, 3 }
  0x23   : > { %s112_s21 = scalar_lea.sflag (!%p106_p2), [#allocation3], %s536_s16  ;;  %s115_s22 = scalar_lea.vmem (!%p106_p2), [#allocation2], %s283_s20 }
  0x27   : > { %417 = dma.done.wait (%p493_p6), %s112_s21, 128  }
  0x28   : > { %419 = vsyncadd (%p493_p6), %s112_s21, 4294967168  ;;  %v135_v0 = vld [vmem:[%s115_s22] sm:$0xff]  ;;  %vm143_vm0 = vcmask 1043456   ;;  %s291_s17 = sshll.u32 %s471_s10, 3  ;;  %s134_s26 = scalar_lea.vmem [#allocation5], %s283_s20 }
  0x29   : > { %v136_v1 = vmul.f32 %v135_v0, %v135_v0  ;;  %s201_s25 = scalar_lea.hbm %s585_s1, %s291_s17  ;;  %s203_s10 = sshll.u32 %s134_s26, 4  ;;  %s204_s10 = int_to_ptr.vmem [resolvable:$true] %s203_s10 }
  0x2a   : > { %s205_s27 = sshll.u32 %s201_s25, 4  ;;  %s190_s28 = scalar_lea.sflag [#allocation4], %s536_s16  ;;  %s206_s27 = int_to_ptr.hbm [resolvable:$true] %s205_s27 }
  0x2b   : > { %138 = vst [vmem:[#allocation1] ss:$2 sm:$0xff] %v136_v1  ;;  %s386_s29 = sshra.s32 %s206_s27, 4  ;;  %s392_s4 = scalar_lea.hbm %s585_s1, 16  ;;  %s387_s29 = int_to_ptr.hbm [resolvable:$true] %s386_s29 }
  0x2c   : > { %s388_s30 = scalar_lea.hbm %s387_s29, 8  ;;  %p393_p0 = scmp.lt.s32.totalorder %s387_s29, %s585_s1 }
  0x2d   : > { %p389_p6 = scmp.ne.s32.totalorder %s387_s29, %s388_s30  ;;  %p394_p1 = scmp.lt.s32.totalorder %s392_s4, %s388_s30 }
  0x2f   : > { %p390_p9 = pnand %p389_p6, %p500_p11  ;;  %p395_p3 = por %p394_p1, %p393_p0 }
  0x31   : > { %p391_p13 = pneg %p390_p9 }
  0x32   : > { %v139_v2 = vld.sshfl [vmem:[#allocation1] sm:$0xff pattern:$0x75316420]  ;;  %v140_v3 = vld.sshfl [vmem:[#allocation1 + $0x8] sm:$0xff pattern:$0x75316420] }
  0x33   : > { %v144_v4 = vsel %vm143_vm0, %v139_v2, 0.0  ;;  %v151_v5 = vsel %vm143_vm0, %v140_v3, 0.0  ;;  %p396_p4 = pnand %p395_p3, %p391_p13 }
  0x34   : > { %v145_v6 = vrot.slane %v144_v4, 4  ;;  %v152_v7 = vrot.slane %v151_v5, 4 }
  0x36   : > { %v146_v8 = vadd.f32 %v145_v6, %v144_v4  ;;  %v153_v9 = vadd.f32 %v152_v7, %v151_v5 }
  0x38   : > { %v147_v10 = vrot.slane %v146_v8, 2  ;;  %v154_v11 = vrot.slane %v153_v9, 2 }
  0x3a   : > { %v148_v12 = vadd.f32 %v147_v10, %v146_v8  ;;  %v155_v13 = vadd.f32 %v154_v11, %v153_v9 }
  0x3c   : > { %v149_v14 = vrot.slane %v148_v12, 1  ;;  %v156_v15 = vrot.slane %v155_v13, 1 }
  0x3e   : > { %v150_v16 = vadd.f32 %v149_v14, %v148_v12  ;;  %v157_v17 = vadd.f32 %v156_v15, %v155_v13 }
  0x40   : > { %v158_v18 = vmul.f32 0.25, %v150_v16  ;;  %v159_v19 = vmul.f32 0.25, %v157_v17 }
  0x42   : > { %v160_v20 = vadd.f32 1e-08, %v158_v18  ;;  %v161_v21 = vadd.f32 1e-08, %v159_v19 }
  0x44   : > { %338 = vrsqrt.f32 %v160_v20  ;;  %vm178_vm3 = vweird.f32 %v161_v21  ;;  %vm168_vm5 = vweird.f32 %v160_v20 }
  0x45   : > { %340 = vrsqrt.f32 %v161_v21 }
  0x4a   : > { %v339_v22 = vpop.eup %338 }
  0x4b   : > { %v341_v23 = vpop.eup %340  ;;  %v163_v24 = vmul.f32 %v339_v22, %v160_v20  ;;  %vm169_vm2 = vweird.f32 %v339_v22 }
  0x4c   : > { %v173_v25 = vmul.f32 %v341_v23, %v161_v21  ;;  %vm179_vm1 = vweird.f32 %v341_v23  ;;  %vm170_vm6 = vmor %vm168_vm5, %vm169_vm2 }
  0x4d   : > { %v164_v26 = vmul.f32 %v339_v22, %v163_v24  ;;  %vm180_vm4 = vmor %vm178_vm3, %vm179_vm1 }
  0x4e   : > { %v174_v27 = vmul.f32 %v341_v23, %v173_v25 }
  0x4f   : > { %v165_v28 = vmul.f32 0.5, %v164_v26 }
  0x50   : > { %v175_v29 = vmul.f32 0.5, %v174_v27 }
  0x51   : > { %v166_v30 = vsub.f32 1.5, %v165_v28 }
  0x52   : > { %v176_v31 = vsub.f32 1.5, %v175_v29 }
  0x53   : > { %v167_v32 = vmul.f32 %v339_v22, %v166_v30 }
  0x54   : > { %v177_v33 = vmul.f32 %v341_v23, %v176_v31 }
  0x55   : > { %v171_v36 = vsel %vm170_vm6, %v339_v22, %v167_v32 }
  0x56   : > { %v181_v34 = vsel %vm180_vm4, %v341_v23, %v177_v33 }
  0x57   : > { %v184_v35 = vrot.slane %v181_v34, 4 }
  0x59   : > { %v185_v37 = vsel %vm143_vm0, %v171_v36, %v184_v35 }
  0x5a   : > { %v187_v38 = vmul.f32 %v185_v37, %v135_v0 }
  0x5c   : > { %188 = vst [vmem:[%s134_s26] sm:$0xff] %v187_v38 }
  0x5d   : > { %399 = shalt.err (!%p396_p4)
}
  0x5e   : > { %294 = dma.vmem_to_hbm [thread:$0]  (%p500_p11), %s204_s10, 128, %s206_s27, %s190_s28  }
  0x5f PF: > { %s217_s13 = sand.u32 1, %s426_s6   ;;  %p591_p7 = scmp.ge.s32.totalorder %s438_s9, 2 }
  0x60   : > { %s218_s14 = scalar_lea.sflag [#allocation4], %s217_s13 }
  0x61   : > { %p301_p5 = pnand %p591_p7, %p504_p12 }
  0x63   : > { %p302_p8 = pneg %p301_p5 }
  0x65   : > { %421 = dma.done.wait (%p302_p8), %s218_s14, 128  }
  0x66   : > { %423 = vsyncadd (%p302_p8), %s218_s14, 4294967168  ;;  %p14_p10 = scmp.ge.s32.totalorder %s475_s12, 4   ;;  %s592_s6 = smov %s430_s7 }
  0x67   : > { %s593_s7 = smov %s434_s8  ;;  %s594_s8 = smov %s487_s15 }
  0x68   : > { %s595_s9 = smov %s475_s12  ;;  %16 = sbr.rel (!%p14_p10) target bundleno = 5 (0x5), region = 69 }
  0x6d   :  { %224 = vsyncpa [#allocation3], 1 }
  0x6e   :  { %226 = vsyncpa [#allocation3 + $0x1], 1 }
  0x6f   :  { %227 = vsyncpa [#allocation4], 1 }
  0x70   :  { %229 = vsyncpa [#allocation4 + $0x1], 1 }

</bundles_post_ra>
